<compile_context>
chip_gen: v6e
topology: v6e:2x2x1
jax: 0.10.0
libtpu: 0.0.40
codegen_flags: <defaults>
</compile_context>

<pallas_src>
import functools

import numpy as np
import jax
import jax.numpy as jnp
from jax.experimental import pallas as pl
from jax.experimental.pallas import tpu as pltpu


def _cdiv(a, b):
    return -(-a // b)


def _round_up(a, b):
    return _cdiv(a, b) * b


def _mxu_compute_dtype():
    """bf16 matmul operands on v6e/v7x (full-rate MXU, half the DMA bytes); f32 elsewhere."""
    try:
        kind = jax.devices()[0].device_kind.lower()
    except Exception:
        return jnp.float32
    return jnp.bfloat16 if any(s in kind for s in ("v6", "v7", "7x")) else jnp.float32


def _char_cnn_kernel(ids_ref, w_ref, b_ref, o_ref, *, tb, t_out, compute_dtype):
    # ids_ref: (TB*T_out, KW) int32, tap-shifted: ids[m, k] in [k*Vp, (k+1)*Vp)
    # w_ref:   (KW*Vp, C)     folded (embedding @ conv) weights, VMEM-resident
    # b_ref:   (1, C)         conv bias
    # o_ref:   (TB, C)        pooled output for this batch tile
    ids = ids_ref[...]
    m, kw = ids.shape
    kvp = w_ref.shape[0]

    # Multi-hot LHS: one 1.0 per tap; taps hit disjoint column ranges.
    iota = jax.lax.broadcasted_iota(jnp.int32, (m, kvp), 1)
    hit = iota == ids[:, 0:1]
    for k in range(1, kw):                     # tiny static unroll (KW = 3)
        hit = jnp.logical_or(hit, iota == ids[:, k:k + 1])
    lhs = hit.astype(compute_dtype)

    # Fused gather + all conv taps: one MXU matmul, M = TB*T_out, K = KW*Vp.
    acc = jnp.dot(lhs, w_ref[...], preferred_element_type=jnp.float32)   # (M, C)

    # Max-pool over the char/time axis, then bias (bias is constant over t).
    pooled = jnp.max(acc.reshape(tb, t_out, acc.shape[-1]), axis=1)      # (TB, C)
    o_ref[...] = (pooled + b_ref[...]).astype(o_ref.dtype)


def char_encoder_cnn_forward(input_ids, emb_table, conv_w, conv_b,
                             kernel_width, pad_width):
    """Pallas implementation of CharEncoderCNN.forward (inference: dropout = id)."""
    B, L = input_ids.shape
    V, E = emb_table.shape
    C = conv_w.shape[0]
    kw = kernel_width
    t_pad = L + 2 * pad_width
    t_out = t_pad - kw + 1
    assert t_out >= 1

    compute_dtype = _mxu_compute_dtype()

    # ---- weight-only fold (done once; gather and conv are both linear) ----
    vp = _round_up(V + 1, 8)                    # +1 sentinel zero row, sublane-aligned
    emb_ext = jnp.zeros((vp, E), jnp.float32).at[:V, :].set(emb_table.astype(jnp.float32))
    w = conv_w[:, 0, :, :].astype(jnp.float32)                   # (C, KW, E)
    wfold = jnp.einsum("ve,cke->kvc", emb_ext, w)                # (KW, Vp, C)
    wfold = wfold.reshape(kw * vp, C).astype(compute_dtype)
    bias = conv_b.reshape(1, C).astype(jnp.float32)

    # ---- id-side glue (tiny int32): sentinel-pad the char axis and pre-shift
    #      per-tap ids so the kernel LHS is an im2col in index space.
    sentinel = V                                # row V of emb_ext is the zero-pad row
    ids_pad = jnp.pad(input_ids.astype(jnp.int32),
                      ((0, 0), (pad_width, pad_width)), constant_values=sentinel)
    taps = jnp.stack([ids_pad[:, k:k + t_out] for k in range(kw)], axis=-1)  # (B, T_out, KW)
    taps = taps + jnp.arange(kw, dtype=jnp.int32) * vp

    # ---- batch tiling: TB multiple of 8, >= 2 grid steps (two v7x TensorCores),
    #      pipeline overhead amortized over TB*T_out matmul rows per step.
    tb_target = 128
    num_steps = max(2, _cdiv(B, tb_target))
    tb = max(8, _round_up(_cdiv(B, num_steps), 8))
    b_pad = num_steps * tb
    taps = jnp.pad(taps, ((0, b_pad - B), (0, 0), (0, 0)), constant_values=sentinel)
    ids_flat = taps.reshape(b_pad * t_out, kw)

    kernel = functools.partial(_char_cnn_kernel, tb=tb, t_out=t_out,
                               compute_dtype=compute_dtype)

    # NOTE: output lane width stays C=32; packing 4 batch rows per 128-lane output
    # row would make stores fully dense but is skipped for small B / simplicity.
    out = pl.pallas_call(
        kernel,
        out_shape=jax.ShapeDtypeStruct((b_pad, C), jnp.float32),
        grid=(num_steps,),
        in_specs=[
            pl.BlockSpec((tb * t_out, kw), lambda i: (i, 0)),    # ids for this batch tile
            pl.BlockSpec((kw * vp, C), lambda i: (0, 0)),        # folded weights (resident)
            pl.BlockSpec((1, C), lambda i: (0, 0)),              # bias (resident)
        ],
        out_specs=pl.BlockSpec((tb, C), lambda i: (i, 0)),
        compiler_params=pltpu.CompilerParams(
            dimension_semantics=("parallel",)),
    )(ids_flat, wfold, bias)

    return out[:B]


if __name__ == "__main__":
    # Module hyper-parameters (small, consistent with CharEncoderCNN.__init__)
    vocab_size = 30
    embedding_size = 16
    out_channels = 32
    kernel_width = 3
    pad_width = 1
    B, L = 2, 16        # batch of char-id sequences, max word length

    key = jax.random.PRNGKey(0)
    k_emb, k_w, k_b, k_ids = jax.random.split(key, 4)

    # Embedding init "like Lipton's paper": U(-sqrt(3/E), sqrt(3/E))
    emb_bound = float(np.sqrt(3.0 / embedding_size))
    emb_table = jax.random.uniform(k_emb, (vocab_size, embedding_size),
                                   jnp.float32, -emb_bound, emb_bound)

    # Conv2d default-style init: U(-1/sqrt(fan_in), 1/sqrt(fan_in))
    fan_in = 1 * kernel_width * embedding_size
    w_bound = float(1.0 / np.sqrt(fan_in))
    conv_w = jax.random.uniform(
        k_w, (out_channels, 1, kernel_width, embedding_size),
        jnp.float32, -w_bound, w_bound)
    conv_b = jax.random.uniform(k_b, (out_channels,), jnp.float32,
                                -w_bound, w_bound)

    input_ids = jax.random.randint(k_ids, (B, L), 0, vocab_size, jnp.int32)

    out = char_encoder_cnn_forward(input_ids, emb_table, conv_w, conv_b,
                                   kernel_width, pad_width)
    out = jax.block_until_ready(out)

    # ---- pure-JAX reference (gather -> conv -> max-pool), f32 ----
    embedded = jnp.take(emb_table, input_ids, axis=0)
    emb_pad = jnp.pad(embedded, ((0, 0), (pad_width, pad_width), (0, 0)))
    t_out = L + 2 * pad_width - kernel_width + 1
    w_ref = jnp.transpose(conv_w[:, 0, :, :], (1, 2, 0))          # (KW, E, C)
    acc = jnp.zeros((B, t_out, out_channels), jnp.float32)
    for k in range(kernel_width):
        acc = acc + jnp.einsum("bte,ec->btc", emb_pad[:, k:k + t_out, :],
                               w_ref[k], precision="highest")
    ref = jnp.max(acc + conv_b, axis=1)

    np.testing.assert_allclose(np.asarray(out), np.asarray(ref),
                               rtol=2e-2, atol=2e-2)
    print("KERNEL_OK")
</pallas_src>

<mosaic_0001>
module attributes {stable_mosaic.version = 11 : i64} {
  func.func @_char_cnn_kernel(%arg0: i32, %arg1: memref<128x3xi32, #tpu.memory_space<vmem>>, %arg2: memref<96x32xf32, #tpu.memory_space<vmem>>, %arg3: memref<1x32xf32, #tpu.memory_space<vmem>>, %arg4: memref<8x32xf32, #tpu.memory_space<vmem>>) attributes {dimension_semantics = [#tpu.dimension_semantics<parallel>], iteration_bounds = array<i64: 2>, scalar_prefetch = 0 : i64, scratch_operands = 0 : i64, tpu.core_type = #tpu.core_type<tc>, window_params = [{transform_indices = @transform_0, window_bounds = array<i64: 128, 3>}, {pipeline_mode = #tpu.pipeline_mode<synchronous>, transform_indices = @transform_1, window_bounds = array<i64: 96, 32>}, {pipeline_mode = #tpu.pipeline_mode<synchronous>, transform_indices = @transform_2, window_bounds = array<i64: 1, 32>}, {transform_indices = @transform_3, window_bounds = array<i64: 8, 32>}]} {
    %c0 = arith.constant 0 : index
    %c0_0 = arith.constant 0 : index
    %0 = vector.load %arg1[%c0, %c0_0] : memref<128x3xi32, #tpu.memory_space<vmem>>, vector<128x3xi32>
    %1 = tpu.iota {dimensions = array<i32: 1>} : vector<128x96xi32>
    %2 = vector.extract_strided_slice %0 {offsets = [0, 0], sizes = [128, 1], strides = [1, 1]} : vector<128x3xi32> to vector<128x1xi32>
    %3 = vector.broadcast %2 : vector<128x1xi32> to vector<128x96xi32>
    %4 = arith.cmpi eq, %1, %3 : vector<128x96xi32>
    %5 = vector.extract_strided_slice %0 {offsets = [0, 1], sizes = [128, 1], strides = [1, 1]} : vector<128x3xi32> to vector<128x1xi32>
    %6 = vector.broadcast %5 : vector<128x1xi32> to vector<128x96xi32>
    %7 = arith.cmpi eq, %1, %6 : vector<128x96xi32>
    %8 = arith.ori %4, %7 : vector<128x96xi1>
    %9 = vector.extract_strided_slice %0 {offsets = [0, 2], sizes = [128, 1], strides = [1, 1]} : vector<128x3xi32> to vector<128x1xi32>
    %10 = vector.broadcast %9 : vector<128x1xi32> to vector<128x96xi32>
    %11 = arith.cmpi eq, %1, %10 : vector<128x96xi32>
    %12 = arith.ori %8, %11 : vector<128x96xi1>
    %13 = arith.extui %12 : vector<128x96xi1> to vector<128x96xi32>
    %14 = arith.sitofp %13 : vector<128x96xi32> to vector<128x96xf32>
    %c0_1 = arith.constant 0 : index
    %c0_2 = arith.constant 0 : index
    %15 = vector.load %arg2[%c0_1, %c0_2] : memref<96x32xf32, #tpu.memory_space<vmem>>, vector<96x32xf32>
    %cst = arith.constant dense<0.000000e+00> : vector<128x32xf32>
    %16 = tpu.matmul %14, %15, %cst {dimension_numbers = #tpu.dot_dimension_numbers<[1], [0], [0], [1], [0, 0, 1, 1], [], []>} : vector<128x96xf32>, vector<96x32xf32>, vector<128x32xf32> -> vector<128x32xf32>
    %17 = vector.shape_cast %16 : vector<128x32xf32> to vector<8x16x32xf32>
    %cst_3 = arith.constant dense<0xFF800000> : vector<8x32xf32>
    %18 = vector.multi_reduction <maximumf>, %17, %cst_3 [1] : vector<8x16x32xf32> to vector<8x32xf32>
    %c0_4 = arith.constant 0 : index
    %c0_5 = arith.constant 0 : index
    %19 = vector.load %arg3[%c0_4, %c0_5] : memref<1x32xf32, #tpu.memory_space<vmem>>, vector<1x32xf32>
    %20 = vector.broadcast %19 : vector<1x32xf32> to vector<8x32xf32>
    %21 = arith.addf %18, %20 : vector<8x32xf32>
    %c0_6 = arith.constant 0 : index
    %c0_7 = arith.constant 0 : index
    %22 = vector.load %arg4[%c0_6, %c0_7] : memref<8x32xf32, #tpu.memory_space<vmem>>, vector<8x32xf32>
    tpu.vector_store %arg4[%c0_6, %c0_7], %21 {strides = array<i32>} : memref<8x32xf32, #tpu.memory_space<vmem>>, vector<8x32xf32>,
    return
  }
  func.func @transform_0(%arg0: i32) -> (i32, i32) {
    %c0_i32 = arith.constant 0 : i32
    %c0_i32_0 = arith.constant 0 : i32
    return %arg0, %c0_i32 : i32, i32
  }
  func.func @transform_1(%arg0: i32) -> (i32, i32) {
    %c0_i32 = arith.constant 0 : i32
    %c0_i32_0 = arith.constant 0 : i32
    %c0_i32_1 = arith.constant 0 : i32
    return %c0_i32, %c0_i32_0 : i32, i32
  }
  func.func @transform_2(%arg0: i32) -> (i32, i32) {
    %c0_i32 = arith.constant 0 : i32
    %c0_i32_0 = arith.constant 0 : i32
    %c0_i32_1 = arith.constant 0 : i32
    return %c0_i32, %c0_i32_0 : i32, i32
  }
  func.func @transform_3(%arg0: i32) -> (i32, i32) {
    %c0_i32 = arith.constant 0 : i32
    %c0_i32_0 = arith.constant 0 : i32
    return %arg0, %c0_i32 : i32, i32
  }
}

</mosaic_0001>

<bundles_post_ra>
// kernel: tpu_custom_call.1
= control target key start
LH: loop header
LB: loop body
LE: loop exit
PB: predicated region body
PF: predicated region fallthrough
CT: control target
= control target key end

     0   :  { %8 = vsyncpa [#allocation3], 0  ;;  %s1486_s0 = inlined_call_operand.vmem [shape: s32[256,3], index: 0, kind: input, shape index: {}]   ;;  %s1487_s1 = inlined_call_operand.vmem [shape: f32[96,32], index: 1, kind: input, shape index: {}]   ;;  %s1488_s2 = inlined_call_operand.vmem [shape: f32[1,32], index: 2, kind: input, shape index: {}]   ;;  %s1489_s3 = inlined_call_operand.hbm [shape: f32[16,32], index: 3, kind: output, shape index: {}]  }
   0x1   :  { %10 = vsyncpa [#allocation3 + $0x1], 0  ;;  %s1141_s12 = smov 0   ;;  %s1143_s13 = smov 0  }
   0x2   :  { %s1145_s14 = smov 0   ;;  %s1147_s15 = smov 0  }
   0x3 LB: > { %s1162_s16 = sadd.s32 4294967295, %s1114_s15   ;;  %s843_s17 = sadd.s32 4294967294, %s1114_s15   ;;  %s1114_s15 = sphi %s1147_s15, %s1495_s15   ;;  %s1110_s14 = sphi %s1145_s14, %s1494_s14   ;;  %s1106_s13 = sphi %s1143_s13, %s1493_s13   ;;  %s1102_s12 = sphi %s1141_s12, %s1492_s12  }
   0x4   : > { %s1166_s18 = sadd.s32 1, %s1114_s15   ;;  %s91_s19 = sadd.s32 1, %s1110_s14 }
   0x5   : > { %s88_s20 = ssub.s32 %s1114_s15, %s1166_s18  ;;  %p101_p0 = scmp.ne.s32.totalorder %s1110_s14, %s1106_s13 }
   0x6   : > { %p89_p1 = scmp.eq.s32.totalorder %s88_s20, 0  ;;  %p102_p2 = scmp.eq.s32.totalorder %s1162_s16, 1 }
   0x7   : > { %p107_p3 = scmp.ne.s32.totalorder %s1106_s13, %s1102_s12  ;;  %p108_p4 = scmp.eq.s32.totalorder %s843_s17, 1 }
   0x8   : > { %s1177_s21 = scalar_select %p89_p1, %s1110_s14, %s91_s19  }
   0x9   : > { %p1179_p5 = por %p102_p2, %p101_p0  ;;  %p1183_p6 = por %p108_p4, %p107_p3 }
   0xa   : > { %p846_p7 = scmp.ge.s32.totalorder %s1114_s15, 1  ;;  %p141_p8 = scmp.lt.s32.totalorder %s1114_s15, 3 }
   0xc   : > { %p142_p9 = pnand %p846_p7, %p141_p8 }
   0xd   : > { %s848_s24 = sshll.u32 (!%p142_p9), %s1162_s16, 4  ;;  %s162_s10 = sand.u32 (!%p142_p9), 1, %s1106_s13  }
   0xe   : > { %145 = sbr.rel (%p142_p9) target bundleno = 514 (0x202), region = 32  ;;  %p166_p10 = scmp.lt.s32.totalorder (!%p142_p9), %s848_s24, 31 }
   0xf   : > { %s847_s11 = sshll.u32 (!%p142_p9), %s162_s10, 3  ;;  %s884_s17 = sshll.u32 (!%p142_p9), %s1162_s16, 7 }
  0x10   : > { %s164_s19 = scalar_lea.vmem (!%p142_p9), [#allocation2], %s847_s11  ;;  %s1448_s26 = scalar_lea.hbm (!%p142_p9), %s1489_s3, %s884_s17 }
  0x11   : > { %s784_s20 = sshll.u32 (!%p142_p9), %s164_s19, 4  ;;  %s771_s27 = scalar_lea.sflag (!%p142_p9), [#allocation3], %s162_s10  ;;  %s785_s20 = int_to_ptr.vmem [resolvable:$true] %s784_s20 }
  0x12   : > { %s1054_s29 = scalar_lea.vmem (!%p142_p9), %s785_s20, 128  ;;  %s1120_s16 = smov (!%p142_p9), [#allocation2]  }
  0x13   : > { %v1116_v0 = vmov 0   ;;  %s1497_s24 = smov (!%p166_p10, %s848_s24), 31  ;;  %v1117_v4 = vmov 1   ;;  %v1118_v6 = vmov 2   ;;  %v456_v11 = vld [vmem:[%s1487_s1 + $0x58] sm:$0xff]  ;;  %v455_v12 = vld [vmem:[%s1487_s1 + $0x50] sm:$0xff]  ;;  %v187_v38 = vlaneseq  ;;  %p1055_p11 = scmp.ne.s32.totalorder %s785_s20, %s1054_s29 }
  0x14   : > { %1031 = vset.pattern.permute.xlu1 %v1116_v0  ;;  %1030 = vset.pattern.permute.xlu0 %v1116_v0  ;;  %s849_s25 = sshll.u32 %s1497_s24, 3  ;;  %v454_v13 = vld [vmem:[%s1487_s1 + $0x48] sm:$0xff]  ;;  %v453_v15 = vld [vmem:[%s1487_s1 + $0x40] sm:$0xff]  ;;  %v452_v16 = vld [vmem:[%s1487_s1 + $0x38] sm:$0xff]  ;;  %vm457_vm4 = vcmask 785408   ;;  %v1119_v46 = vmov 0.0  }
  0x15   : > { %s1195_s28 = scalar_lea.vmem %s1486_s0, %s849_s25  ;;  %915 = vmatprep.subr.mxu0 %v456_v11  ;;  %963 = vmatprep.subr.mxu1 %v456_v11  ;;  %v451_v18 = vld [vmem:[%s1487_s1 + $0x30] sm:$0xff]  ;;  %v450_v19 = vld [vmem:[%s1487_s1 + $0x28] sm:$0xff]  ;;  %v449_v21 = vld [vmem:[%s1487_s1 + $0x20] sm:$0xff]  ;;  %v1324_v41 = vand.u32 127, %v187_v38  ;;  %p1056_p12 = pnand %p1055_p11, %p1179_p5 }
  0x16   : > { %v1198_v1 = vld [vmem:[%s1195_s28 + $0x8] sm:$0xff]  ;;  %v171_v2 = vld [vmem:[%s1195_s28] sm:$0xff]  ;;  %v1209_v5 = vld [vmem:[%s1195_s28 + $0x50] sm:$0xff]  ;;  %916 = vmatpush3.msra.mxu0 %v456_v11  ;;  %975 = vmatpush3.msra.mxu1 %v456_v11  ;;  %s1058_s30 = sshll.u32 %s1120_s16, 4  ;;  %s1059_s30 = int_to_ptr.vmem [resolvable:$false] %s1058_s30 }
  0x17   : > { %193 = vperm.xlu1 %1031, %v1198_v1   ;;  %190 = vperm.xlu0 %1030, %v171_v2   ;;  %v1203_v3 = vld [vmem:[%s1195_s28 + $0x48] sm:$0xff]  ;;  %v1218_v8 = vld [vmem:[%s1195_s28 + $0x10] sm:$0xff]  ;;  %v179_v10 = vld [vmem:[%s1195_s28 + $0x40] sm:$0xff]  ;;  %p1057_p13 = pneg %p1056_p12  ;;  %s1060_s4 = scalar_lea.vmem %s1059_s30, 256 }
  0x18   : > { %v1214_v7 = vld [vmem:[%s1195_s28 + $0x28] sm:$0xff]  ;;  %v1221_v9 = vld [vmem:[%s1195_s28 + $0x30] sm:$0xff]  ;;  %917 = vmatprep.subr.mxu0 %v455_v12  ;;  %v174_v14 = vld [vmem:[%s1195_s28 + $0x18] sm:$0xff]  ;;  %964 = vmatprep.subr.mxu1 %v455_v12  ;;  %p1061_p0 = scmp.lt.s32.totalorder %s785_s20, %s1059_s30  ;;  %p1062_p1 = scmp.lt.s32.totalorder %s1060_s4, %s1054_s29 }
  0x19   : > { %918 = vmatpush3.msra.mxu0 %v455_v12  ;;  %v1249_v17 = vld [vmem:[%s1195_s28 + $0x60] sm:$0xff]  ;;  %976 = vmatpush3.msra.mxu1 %v455_v12  ;;  %v1260_v20 = vld [vmem:[%s1195_s28 + $0x38] sm:$0xff]  ;;  %v1271_v23 = vld [vmem:[%s1195_s28 + $0x70] sm:$0xff] }
  0x1a   : > { %919 = vmatprep.subr.mxu0 %v454_v13  ;;  %965 = vmatprep.subr.mxu1 %v454_v13  ;;  %v448_v22 = vld [vmem:[%s1487_s1 + $0x18] sm:$0xff]  ;;  %v447_v24 = vld [vmem:[%s1487_s1 + $0x10] sm:$0xff]  ;;  %v446_v25 = vld [vmem:[%s1487_s1 + $0x8] sm:$0xff]  ;;  %p1063_p2 = por %p1062_p1, %p1061_p0 }
  0x1b   : > { %1032 = vset.pattern.permute.xlu1 %v1117_v4  ;;  %217 = vperm.xlu0 %1030, %v1203_v3   ;;  %v445_v26 = vld [vmem:[%s1487_s1] sm:$0xff]  ;;  %v182_v28 = vld [vmem:[%s1195_s28 + $0x58] sm:$0xff]  ;;  %v184_v29 = vld [vmem:[%s1195_s28 + $0x68] sm:$0xff] }
  0x1c   : > { %257 = vperm.xlu1 %1032, %v1198_v1   ;;  %920 = vmatpush3.msra.mxu0 %v454_v13  ;;  %v175_v27 = vld [vmem:[%s1195_s28 + $0x20] sm:$0xff]  ;;  %v186_v32 = vld [vmem:[%s1195_s28 + $0x78] sm:$0xff]  ;;  %p1064_p3 = pnand %p1063_p2, %p1057_p13 }
  0x1d   : > { %921 = vmatprep.subr.mxu0 %v453_v15  ;;  %977 = vmatpush3.msra.mxu1 %v454_v13 }
  0x1e   : > { %922 = vmatpush3.msra.mxu0 %v453_v15  ;;  %966 = vmatprep.subr.mxu1 %v453_v15 }
  0x1f   : > { %220 = vperm.xlu0 %1030, %v1209_v5   ;;  %923 = vmatprep.subr.mxu0 %v452_v16 }
  0x20   : > { %1033 = vset.pattern.permute.xlu1 %v1118_v6  ;;  %924 = vmatpush3.msra.mxu0 %v452_v16 }
  0x21   : > { %334 = vperm.xlu1 %1033, %v171_v2   ;;  %925 = vmatprep.subr.mxu0 %v451_v18 }
  0x22   : > { %926 = vmatpush3.msra.mxu0 %v451_v18  ;;  %978 = vmatpush3.msra.mxu1 %v453_v15 }
  0x23   : > { %205 = vperm.xlu0 %1030, %v1214_v7   ;;  %927 = vmatprep.subr.mxu0 %v450_v19 }
  0x24   : > { %928 = vmatpush3.msra.mxu0 %v450_v19  ;;  %967 = vmatprep.subr.mxu1 %v452_v16 }
  0x25   : > { %1034 = vset.pattern.permute.xlu1 %v1116_v0  ;;  %929 = vmatprep.subr.mxu0 %v449_v21 }
  0x26   : > { %196 = vperm.xlu1 %1034, %v1218_v8   ;;  %930 = vmatpush3.msra.mxu0 %v449_v21 }
  0x27   : > { %208 = vperm.xlu0 %1030, %v1221_v9   ;;  %931 = vmatprep.subr.mxu0 %v448_v22 }
  0x28   : > { %979 = vmatpush3.msra.mxu1 %v452_v16  ;;  %932 = vmatpush3.msra.mxu0 %v448_v22 }
  0x29   : > { %968 = vmatprep.subr.mxu1 %v451_v18  ;;  %933 = vmatprep.subr.mxu0 %v447_v24 }
  0x2a   : > { %214 = vperm.xlu1 %1034, %v179_v10   ;;  %980 = vmatpush3.msra.mxu1 %v451_v18 }
  0x2b   : > { %1044 = vset.pattern.permute.xlu0 %v1117_v4  ;;  %934 = vmatpush3.msra.mxu0 %v447_v24 }
  0x2c   : > { %254 = vperm.xlu0 %1044, %v171_v2   ;;  %969 = vmatprep.subr.mxu1 %v450_v19 }
  0x2d   : > { %935 = vmatprep.subr.mxu0 %v446_v25  ;;  %981 = vmatpush3.msra.mxu1 %v450_v19 }
  0x2e   : > { %1035 = vset.pattern.permute.xlu1 %v1117_v4  ;;  %936 = vmatpush3.msra.mxu0 %v446_v25 }
  0x2f   : > { %278 = vperm.xlu1 %1035, %v179_v10   ;;  %970 = vmatprep.subr.mxu1 %v449_v21 }
  0x30   : > { %260 = vperm.xlu0 %1044, %v1218_v8   ;;  %937 = vmatprep.subr.mxu0 %v445_v26 }
  0x31   : > { %982 = vmatpush3.msra.mxu1 %v449_v21  ;;  %938 = vmatpush3.msra.mxu0 %v445_v26 }
  0x32   : > { %971 = vmatprep.subr.mxu1 %v448_v22 }
  0x33   : > { %1036 = vset.pattern.permute.xlu1 %v1116_v0  ;;  %983 = vmatpush3.msra.mxu1 %v448_v22 }
  0x34   : > { %199 = vperm.xlu1 %1036, %v174_v14   ;;  %269 = vperm.xlu0 %1044, %v1214_v7  }
  0x35   : > { %972 = vmatprep.subr.mxu1 %v447_v24 }
  0x36   : > { %984 = vmatpush3.msra.mxu1 %v447_v24 }
  0x37   : > { %973 = vmatprep.subr.mxu1 %v446_v25 }
  0x38   : > { %1037 = vset.pattern.permute.xlu1 %v1117_v4  ;;  %290 = vperm.xlu0 %1044, %v1249_v17  }
  0x39   : > { %263 = vperm.xlu1 %1037, %v174_v14   ;;  %985 = vmatpush3.msra.mxu1 %v446_v25 }
  0x3a   : > { %974 = vmatprep.subr.mxu1 %v445_v26 }
  0x3b   : > { %986 = vmatpush3.msra.mxu1 %v445_v26 }
  0x3c   : > { %275 = vperm.xlu0 %1044, %v1260_v20  }
  0x3d   : > { %281 = vperm.xlu1 %1037, %v1203_v3  }
  0x40   : > { %296 = vperm.xlu0 %1044, %v1271_v23  }
  0x41   : > { %1038 = vset.pattern.permute.xlu1 %v1118_v6 }
  0x42   : > { %358 = vperm.xlu1 %1038, %v179_v10  }
  0x44   : > { %1051 = vset.pattern.permute.xlu0 %v1118_v6 }
  0x45   : > { %337 = vperm.xlu0 %1051, %v1198_v1  }
  0x46   : > { %343 = vperm.xlu1 %1038, %v174_v14  }
  0x49   : > { %340 = vperm.xlu0 %1051, %v1218_v8  }
  0x4a   : > { %1039 = vset.pattern.permute.xlu1 %v1116_v0 }
  0x4b   : > { %202 = vperm.xlu1 %1039, %v175_v27  }
  0x4d   : > { %361 = vperm.xlu0 %1051, %v1203_v3  }
  0x4f   : > { %1040 = vset.pattern.permute.xlu1 %v1117_v4 }
  0x50   : > { %266 = vperm.xlu1 %1040, %v175_v27  }
  0x51   : > { %364 = vperm.xlu0 %1051, %v1209_v5  }
  0x54   : > { %284 = vperm.xlu1 %1040, %v1209_v5  }
  0x55   : > { %352 = vperm.xlu0 %1051, %v1221_v9  }
  0x58   : > { %1041 = vset.pattern.permute.xlu1 %v1116_v0 }
  0x59   : > { %223 = vperm.xlu1 %1041, %v182_v28   ;;  %373 = vperm.xlu0 %1051, %v184_v29  }
  0x5d   : > { %1042 = vset.pattern.permute.xlu1 %v1117_v4  ;;  %376 = vperm.xlu0 %1051, %v1271_v23  }
  0x5e   : > { %287 = vperm.xlu1 %1042, %v182_v28  }
  0x62   : > { %1043 = vset.pattern.permute.xlu1 %v1118_v6 }
  0x63   : > { %346 = vperm.xlu1 %1043, %v175_v27  }
  0x67   : > { %349 = vperm.xlu1 %1043, %v1214_v7  }
  0x6b   : > { %367 = vperm.xlu1 %1043, %v182_v28  }
  0x6f   : > { %1045 = vset.pattern.permute.xlu1 %v1116_v0 }
  0x70   : > { %226 = vperm.xlu1 %1045, %v1249_v17  }
  0x74   : > { %1046 = vset.pattern.permute.xlu1 %v1117_v4 }
  0x75   : > { %272 = vperm.xlu1 %1046, %v1221_v9  }
  0x79   : > { %1047 = vset.pattern.permute.xlu1 %v1116_v0 }
  0x7a   : > { %211 = vperm.xlu1 %1047, %v1260_v20  }
  0x7e   : > { %229 = vperm.xlu1 %1047, %v184_v29  }
  0x82   : > { %1048 = vset.pattern.permute.xlu1 %v1117_v4 }
  0x83   : > { %293 = vperm.xlu1 %1048, %v184_v29  }
  0x87   : > { %1049 = vset.pattern.permute.xlu1 %v1118_v6 }
  0x88   : > { %370 = vperm.xlu1 %1049, %v1249_v17  }
  0x8c   : > { %355 = vperm.xlu1 %1049, %v1260_v20  }
  0x90   : > { %1050 = vset.pattern.permute.xlu1 %v1116_v0 }
  0x91   : > { %232 = vperm.xlu1 %1050, %v1271_v23  }
  0x92   : > { %v194_v30 = vpop.permute.xlu1 %193  ;;  %v191_v31 = vpop.permute.xlu0 %190 }
  0x93   : > { %vm237_vm0 = vcmp.eq.s32.totalorder %v1324_v41, %v191_v31  ;;  %vm238_vm12 = vcmp.eq.s32.totalorder %v1324_v41, %v194_v30 }
  0x95   : > { %235 = vperm.xlu1 %1050, %v186_v32  }
  0x96   : > { %v1314_v33 = vpop.permute.xlu0 %217 }
  0x97   : > { %v258_v34 = vpop.permute.xlu1 %257 }
  0x98   : > { %vm302_vm8 = vcmp.eq.s32.totalorder %v1324_v41, %v258_v34 }
  0x99   : > { %1052 = vset.pattern.permute.xlu1 %v1117_v4  ;;  %vm318_vm14 = vmor %vm238_vm12, %vm302_vm8 }
  0x9a   : > { %299 = vperm.xlu1 %1052, %v186_v32   ;;  %v1317_v35 = vpop.permute.xlu0 %220 }
  0x9c   : > { %v335_v36 = vpop.permute.xlu1 %334 }
  0x9d   : > { %vm381_vm2 = vcmp.eq.s32.totalorder %v1324_v41, %v335_v36 }
  0x9e   : > { %1053 = vset.pattern.permute.xlu1 %v1118_v6  ;;  %v1320_v37 = vpop.permute.xlu0 %205 }
  0x9f   : > { %379 = vperm.xlu1 %1053, %v186_v32  }
  0xa1   : > { %v197_v39 = vpop.permute.xlu1 %196 }
  0xa2   : > { %v1322_v40 = vpop.permute.xlu0 %208 }
  0xa5   : > { %v215_v42 = vpop.permute.xlu1 %214 }
  0xa6   : > { %vm245_vm7 = vcmp.eq.s32.totalorder %v1324_v41, %v215_v42 }
  0xa7   : > { %v255_v43 = vpop.permute.xlu0 %254 }
  0xa8   : > { %vm301_vm1 = vcmp.eq.s32.totalorder %v1324_v41, %v255_v43 }
  0xa9   : > { %vm317_vm3 = vmor %vm237_vm0, %vm301_vm1  ;;  %vm239_vm1 = vcmp.eq.s32.totalorder %v1324_v41, %v197_v39 }
  0xaa   : > { %v279_v44 = vpop.permute.xlu1 %278  ;;  %vm397_vm5 = vmor %vm317_vm3, %vm381_vm2 }
  0xab   : > { %v261_v45 = vpop.permute.xlu0 %260  ;;  %v850_v47 = vsel %vm397_vm5, 1.0, %v1119_v46  ;;  %vm309_vm6 = vcmp.eq.s32.totalorder %v1324_v41, %v279_v44 }
  0xac   : > { %939 = vmatprep.mubr.msk.f32.mxu0 %vm457_vm4, %v850_v47  ;;  %vm325_vm9 = vmor %vm245_vm7, %vm309_vm6  ;;  %vm303_vm13 = vcmp.eq.s32.totalorder %v1324_v41, %v261_v45 }
  0xad   : > { %vm319_vm5 = vmor %vm239_vm1, %vm303_vm13 }
  0xaf   : > { %v200_v48 = vpop.permute.xlu1 %199  ;;  %v1331_v49 = vpop.permute.xlu0 %269 }
  0xb0   : > { %vm240_vm6 = vcmp.eq.s32.totalorder %v1324_v41, %v200_v48 }
  0xb3   : > { %v1333_v50 = vpop.permute.xlu0 %290 }
  0xb4   : > { %v264_v51 = vpop.permute.xlu1 %263 }
  0xb5   : > { %vm304_vm15 = vcmp.eq.s32.totalorder %v1324_v41, %v264_v51 }
  0xb6   : > { %vm320_vm7 = vmor %vm240_vm6, %vm304_vm15 }
  0xb7   : > { %v1335_v52 = vpop.permute.xlu0 %275 }
  0xb8   : > { %v282_v53 = vpop.permute.xlu1 %281 }
  0xbb   : > { %v1338_v54 = vpop.permute.xlu0 %296 }
  0xbd   : > { %v359_v55 = vpop.permute.xlu1 %358 }
  0xbe   : > { %vm389_vm10 = vcmp.eq.s32.totalorder %v1324_v41, %v359_v55 }
  0xbf   : > { %vm405_vm11 = vmor %vm325_vm9, %vm389_vm10  ;;  %vm246_vm10 = vcmp.eq.s32.totalorder %v1324_v41, %v1314_v33 }
  0xc0   : > { %v338_v56 = vpop.permute.xlu0 %337  ;;  %v858_v57 = vsel %vm405_vm11, 1.0, %v1119_v46  ;;  %vm310_vm11 = vcmp.eq.s32.totalorder %v1324_v41, %v282_v53 }
  0xc1   : > { %vm382_vm0 = vcmp.eq.s32.totalorder %v1324_v41, %v338_v56  ;;  %951 = vmatprep.mubr.msk.f32.mxu1 %vm457_vm4, %v858_v57  ;;  %v344_v58 = vpop.permute.xlu1 %343  ;;  %vm326_vm13 = vmor %vm246_vm10, %vm310_vm11  ;;  %vm242_vm10 = vcmp.eq.s32.totalorder %v1324_v41, %v1320_v37  ;;  %vm306_vm11 = vcmp.eq.s32.totalorder %v1324_v41, %v1331_v49 }
  0xc2   : > { %vm398_vm2 = vmor %vm318_vm14, %vm382_vm0  ;;  %vm384_vm3 = vcmp.eq.s32.totalorder %v1324_v41, %v344_v58  ;;  %vm247_vm0 = vcmp.eq.s32.totalorder %v1324_v41, %v1317_v35 }
  0xc3   : > { %v851_v59 = vsel %vm398_vm2, 1.0, %v1119_v46  ;;  %vm400_vm8 = vmor %vm320_vm7, %vm384_vm3 }
  0xc4   : > { %940 = vmatmul.mubr.msk.f32.vlgmr.msra.gmra.mxu0 %vm457_vm4, %v851_v59  ;;  %v341_v60 = vpop.permute.xlu0 %340  ;;  %v853_v63 = vsel %vm400_vm8, 1.0, %v1119_v46 }
  0xc5   : > { %vm383_vm9 = vcmp.eq.s32.totalorder %v1324_v41, %v341_v60 }
  0xc6   : > { %vm399_vm12 = vmor %vm319_vm5, %vm383_vm9  ;;  %v203_v61 = vpop.permute.xlu1 %202 }
  0xc7   : > { %v852_v62 = vsel %vm399_vm12, 1.0, %v1119_v46  ;;  %vm241_vm7 = vcmp.eq.s32.totalorder %v1324_v41, %v203_v61 }
  0xc8   : > { %942 = vmatprep.mubr.msk.f32.mxu0 %vm457_vm4, %v852_v62  ;;  %v362_v0 = vpop.permute.xlu0 %361 }
  0xc9   : > { %vm390_vm14 = vcmp.eq.s32.totalorder %v1324_v41, %v362_v0  ;;  %943 = vmatmul.mubr.msk.f32.gmra.mxu0 %vm457_vm4, %v853_v63 }
  0xca   : > { %vm406_vm15 = vmor %vm326_vm13, %vm390_vm14 }
  0xcb   : > { %v859_v1 = vsel %vm406_vm15, 1.0, %v1119_v46  ;;  %v267_v2 = vpop.permute.xlu1 %266  ;;  %vm322_vm13 = vmor %vm242_vm10, %vm306_vm11 }
  0xcc   : > { %952 = vmatmul.mubr.msk.f32.vlgmr.msra.gmra.mxu1 %vm457_vm4, %v859_v1  ;;  %v365_v3 = vpop.permute.xlu0 %364  ;;  %vm305_vm6 = vcmp.eq.s32.totalorder %v1324_v41, %v267_v2 }
  0xcd   : > { %vm391_vm1 = vcmp.eq.s32.totalorder %v1324_v41, %v365_v3  ;;  %vm321_vm8 = vmor %vm241_vm7, %vm305_vm6  ;;  %vm243_vm7 = vcmp.eq.s32.totalorder %v1324_v41, %v1322_v40 }
  0xcf   : > { %v285_v4 = vpop.permute.xlu1 %284 }
  0xd0   : > { %vm311_vm2 = vcmp.eq.s32.totalorder %v1324_v41, %v285_v4  ;;  %v353_v15 = vpop.permute.xlu0 %352 }
  0xd1   : > { %vm327_vm3 = vmor %vm247_vm0, %vm311_vm2  ;;  %vm387_vm6 = vcmp.eq.s32.totalorder %v1324_v41, %v353_v15 }
  0xd2   : > { %vm407_vm5 = vmor %vm327_vm3, %vm391_vm1 }
  0xd3   : > { %v860_v5 = vsel %vm407_vm5, 1.0, %v1119_v46 }
  0xd4   : > { %v224_v6 = vpop.permute.xlu1 %223  ;;  %954 = vmatprep.mubr.msk.f32.mxu1 %vm457_vm4, %v860_v5  ;;  %v374_v21 = vpop.permute.xlu0 %373 }
  0xd5   : > { %vm248_vm1 = vcmp.eq.s32.totalorder %v1324_v41, %v224_v6 }
  0xd8   : > { %v377_v27 = vpop.permute.xlu0 %376 }
  0xd9   : > { %v288_v7 = vpop.permute.xlu1 %287 }
  0xda   : > { %vm312_vm15 = vcmp.eq.s32.totalorder %v1324_v41, %v288_v7 }
  0xdb   : > { %vm328_vm2 = vmor %vm248_vm1, %vm312_vm15 }
  0xde   : > { %v347_v8 = vpop.permute.xlu1 %346 }
  0xdf   : > { %vm385_vm9 = vcmp.eq.s32.totalorder %v1324_v41, %v347_v8 }
  0xe0   : > { %vm401_vm12 = vmor %vm321_vm8, %vm385_vm9 }
  0xe1   : > { %v854_v9 = vsel %vm401_vm12, 1.0, %v1119_v46 }
  0xe2   : > { %v350_v10 = vpop.permute.xlu1 %349  ;;  %945 = vmatprep.mubr.msk.f32.mxu0 %vm457_vm4, %v854_v9 }
  0xe3   : > { %vm386_vm14 = vcmp.eq.s32.totalorder %v1324_v41, %v350_v10 }
  0xe4   : > { %vm402_vm0 = vmor %vm322_vm13, %vm386_vm14  ;;  %vm394_vm14 = vcmp.eq.s32.totalorder %v1324_v41, %v374_v21 }
  0xe5   : > { %v855_v11 = vsel %vm402_vm0, 1.0, %v1119_v46  ;;  %vm313_vm0 = vcmp.eq.s32.totalorder %v1324_v41, %v1333_v50 }
  0xe6   : > { %v368_v12 = vpop.permute.xlu1 %367  ;;  %946 = vmatmul.mubr.msk.f32.gmra.mxu0 %vm457_vm4, %v855_v11 }
  0xe7   : > { %vm392_vm3 = vcmp.eq.s32.totalorder %v1324_v41, %v368_v12 }
  0xe8   : > { %vm408_vm5 = vmor %vm328_vm2, %vm392_vm3 }
  0xe9   : > { %v861_v13 = vsel %vm408_vm5, 1.0, %v1119_v46 }
  0xea   : > { %955 = vmatmul.mubr.msk.f32.gmra.mxu1 %vm457_vm4, %v861_v13 }
  0xeb   : > { %v227_v14 = vpop.permute.xlu1 %226 }
  0xec   : > { %vm249_vm12 = vcmp.eq.s32.totalorder %v1324_v41, %v227_v14 }
  0xed   : > { %vm329_vm1 = vmor %vm249_vm12, %vm313_vm0 }
  0xf0   : > { %v273_v16 = vpop.permute.xlu1 %272 }
  0xf1   : > { %vm307_vm8 = vcmp.eq.s32.totalorder %v1324_v41, %v273_v16 }
  0xf2   : > { %vm323_vm9 = vmor %vm243_vm7, %vm307_vm8  ;;  %vm308_vm7 = vcmp.eq.s32.totalorder %v1324_v41, %v1335_v52 }
  0xf3   : > { %vm403_vm10 = vmor %vm323_vm9, %vm387_vm6 }
  0xf4   : > { %v856_v17 = vsel %vm403_vm10, 1.0, %v1119_v46 }
  0xf5   : > { %v212_v18 = vpop.permute.xlu1 %211  ;;  %948 = vmatprep.mubr.msk.f32.mxu0 %vm457_vm4, %v856_v17 }
  0xf6   : > { %vm244_vm5 = vcmp.eq.s32.totalorder %v1324_v41, %v212_v18 }
  0xf7   : > { %vm324_vm8 = vmor %vm244_vm5, %vm308_vm7  ;;  %vm751_vm7 = vcmask 1042434  }
  0xf9   : > { %v230_v19 = vpop.permute.xlu1 %229 }
  0xfa   : > { %vm250_vm13 = vcmp.eq.s32.totalorder %v1324_v41, %v230_v19 }
  0xfe   : > { %v294_v20 = vpop.permute.xlu1 %293 }
  0xff   : > { %vm314_vm11 = vcmp.eq.s32.totalorder %v1324_v41, %v294_v20 }
 0x100   : > { %vm330_vm15 = vmor %vm250_vm13, %vm314_vm11  ;;  %vm315_vm11 = vcmp.eq.s32.totalorder %v1324_v41, %v1338_v54  ;;  %vm395_vm13 = vcmp.eq.s32.totalorder %v1324_v41, %v377_v27 }
 0x101   : > { %vm410_vm2 = vmor %vm330_vm15, %vm394_vm14 }
 0x102   : > { %v863_v25 = vsel %vm410_vm2, 1.0, %v1119_v46 }
 0x103   : > { %v371_v22 = vpop.permute.xlu1 %370 }
 0x104   : > { %vm393_vm3 = vcmp.eq.s32.totalorder %v1324_v41, %v371_v22 }
 0x105   : > { %vm409_vm6 = vmor %vm329_vm1, %vm393_vm3 }
 0x106   : > { %v862_v23 = vsel %vm409_vm6, 1.0, %v1119_v46  ;;  %vm651_vm6 = vcmask 261120  }
 0x107   : > { %v356_v24 = vpop.permute.xlu1 %355  ;;  %957 = vmatprep.mubr.msk.f32.mxu1 %vm457_vm4, %v862_v23 }
 0x108   : > { %vm388_vm9 = vcmp.eq.s32.totalorder %v1324_v41, %v356_v24  ;;  %958 = vmatmul.mubr.msk.f32.gmra.mxu1 %vm457_vm4, %v863_v25 }
 0x109   : > { %vm404_vm10 = vmor %vm324_vm8, %vm388_vm9  ;;  %vm754_vm8 = vcmask 1043459   ;;  %vm757_vm9 = vcmask 1044484  }
 0x10a   : > { %v857_v26 = vsel %vm404_vm10, 1.0, %v1119_v46  ;;  %vm760_vm10 = vcmask 1045509  }
 0x10b   : > { %949 = vmatmul.mubr.msk.f32.gmra.mxu0 %vm457_vm4, %v857_v26 }
 0x10c   : > { %v233_v28 = vpop.permute.xlu1 %232 }
 0x10d   : > { %vm251_vm12 = vcmp.eq.s32.totalorder %v1324_v41, %v233_v28 }
 0x10e   : > { %vm331_vm14 = vmor %vm251_vm12, %vm315_vm11  ;;  %vm763_vm11 = vcmask 1046534   ;;  %vm766_vm12 = vcmask 1047559  }
 0x10f   : > { %vm411_vm15 = vmor %vm331_vm14, %vm395_vm13 }
 0x110   : > { %v236_v29 = vpop.permute.xlu1 %235  ;;  %v864_v30 = vsel %vm411_vm15, 1.0, %v1119_v46 }
 0x111   : > { %960 = vmatprep.mubr.msk.f32.mxu1 %vm457_vm4, %v864_v30  ;;  %vm252_vm1 = vcmp.eq.s32.totalorder %v1324_v41, %v236_v29 }
 0x115   : > { %v300_v31 = vpop.permute.xlu1 %299 }
 0x116   : > { %vm316_vm0 = vcmp.eq.s32.totalorder %v1324_v41, %v300_v31 }
 0x117   : > { %vm332_vm2 = vmor %vm252_vm1, %vm316_vm0 }
 0x11a   : > { %v380_v32 = vpop.permute.xlu1 %379 }
 0x11b   : > { %vm396_vm3 = vcmp.eq.s32.totalorder %v1324_v41, %v380_v32 }
 0x11c   : > { %vm412_vm5 = vmor %vm332_vm2, %vm396_vm3 }
 0x11d   : > { %v865_v33 = vsel %vm412_vm5, 1.0, %v1119_v46 }
 0x11e   : > { %961 = vmatmul.mubr.msk.f32.gmra.mxu1 %vm457_vm4, %v865_v33  ;;  %vm748_vm4 = vcmask 1041409  }
 0x184   : > { %v941_v34 = vpop.f32.mrf.mxu0 }
 0x185   : > { %v653_v51 = vsel %vm651_vm6, %v941_v34, -inf }
 0x186   : > { %v572_v35 = vpop.f32.mrf.mxu0 }
 0x187   : > { %v652_v49 = vsel %vm651_vm6, %v572_v35, -inf }
 0x188   : > { %v654_v55 = vmax.f32 %v652_v49, %v653_v51 }
 0x189   : > { %v944_v36 = vpop.f32.mrf.mxu0 }
 0x18a   : > { %v662_v41 = vsel %vm651_vm6, %v944_v36, -inf  ;;  %v655_v63 = vrot.slane %v654_v55, 4 }
 0x18b   : > { %v582_v37 = vpop.f32.mrf.mxu0 }
 0x18c   : > { %v953_v39 = vpop.f32.mrf.mxu1  ;;  %v661_v43 = vsel %vm651_vm6, %v582_v37, -inf  ;;  %v656_v14 = vmax.f32 %v654_v55, %v655_v63 }
 0x18d   : > { %v663_v47 = vmax.f32 %v661_v43, %v662_v41  ;;  %v689_v57 = vsel %vm651_vm6, %v953_v39, -inf }
 0x18e   : > { %v612_v42 = vpop.f32.mrf.mxu1  ;;  %v657_v22 = vrot.slane %v656_v14, 2 }
 0x18f   : > { %v664_v52 = vrot.slane %v663_v47, 4  ;;  %v688_v53 = vsel %vm651_vm6, %v612_v42, -inf }
 0x190   : > { %v690_v58 = vmax.f32 %v688_v53, %v689_v57  ;;  %v658_v29 = vmax.f32 %v656_v14, %v657_v22 }
 0x191   : > { %v665_v62 = vmax.f32 %v663_v47, %v664_v52 }
 0x192   : > { %v691_v7 = vrot.slane %v690_v58, 4  ;;  %v659_v36 = vrot.slane %v658_v29, 1 }
 0x193   : > { %v666_v9 = vrot.slane %v665_v62, 2 }
 0x194   : > { %v692_v16 = vmax.f32 %v690_v58, %v691_v7 }
 0x195   : > { %v667_v18 = vmax.f32 %v665_v62, %v666_v9 }
 0x196   : > { %v693_v24 = vrot.slane %v692_v16, 2 }
 0x197   : > { %v668_v26 = vrot.slane %v667_v18, 1 }
 0x198   : > { %v694_v32 = vmax.f32 %v692_v16, %v693_v24 }
 0x199   : > { %v669_v33 = vmax.f32 %v667_v18, %v668_v26 }
 0x19a   : > { %v695_v42 = vrot.slane %v694_v32, 1 }
 0x19c   : > { %v696_v52 = vmax.f32 %v694_v32, %v695_v42 }
 0x1a6   : > { %v947_v38 = vpop.f32.mrf.mxu0 }
 0x1a7   : > { %v671_v46 = vsel %vm651_vm6, %v947_v38, -inf }
 0x1a8   : > { %v592_v40 = vpop.f32.mrf.mxu0 }
 0x1a9   : > { %v670_v44 = vsel %vm651_vm6, %v592_v40, -inf  ;;  %v882_v40 = vld [vmem:[%s1488_s2] ss:$0 sm:$0xff] }
 0x1aa   : > { %v956_v45 = vpop.f32.mrf.mxu1  ;;  %v672_v48 = vmax.f32 %v670_v44, %v671_v46  ;;  %v732_v43 = vadd.f32 %v882_v40, %v669_v33 }
 0x1ab   : > { %v698_v1 = vsel %vm651_vm6, %v956_v45, -inf }
 0x1ac   : > { %v622_v50 = vpop.f32.mrf.mxu1  ;;  %v673_v56 = vrot.slane %v672_v48, 4  ;;  %v747_v53 = vrot.slane %v732_v43, 7 }
 0x1ad   : > { %v697_v59 = vsel %vm651_vm6, %v622_v50, -inf }
 0x1ae   : > { %v674_v0 = vmax.f32 %v672_v48, %v673_v56  ;;  %v699_v3 = vmax.f32 %v697_v59, %v698_v1  ;;  %v660_v48 = vmax.f32 %v658_v29, %v659_v36 }
 0x1b0   : > { %v675_v11 = vrot.slane %v674_v0, 2  ;;  %v700_v15 = vrot.slane %v699_v3, 4  ;;  %v731_v57 = vadd.f32 %v882_v40, %v660_v48 }
 0x1b2   : > { %v676_v19 = vmax.f32 %v674_v0, %v675_v11  ;;  %v701_v23 = vmax.f32 %v699_v3, %v700_v15  ;;  %v749_v62 = vsel %vm748_vm4, %v747_v53, %v731_v57 }
 0x1b4   : > { %v677_v27 = vrot.slane %v676_v19, 1  ;;  %v702_v30 = vrot.slane %v701_v23, 2 }
 0x1b6   : > { %v678_v34 = vmax.f32 %v676_v19, %v677_v27  ;;  %v703_v37 = vmax.f32 %v701_v23, %v702_v30 }
 0x1b8   : > { %v733_v45 = vadd.f32 %v882_v40, %v678_v34  ;;  %v704_v49 = vrot.slane %v703_v37, 1 }
 0x1ba   : > { %v750_v55 = vrot.slane %v733_v45, 6  ;;  %v705_v58 = vmax.f32 %v703_v37, %v704_v49 }
 0x1bc   : > { %v752_v0 = vsel %vm751_vm7, %v750_v55, %v749_v62 }
 0x1c8   : > { %v959_v54 = vpop.f32.mrf.mxu1 }
 0x1c9   : > { %v707_v10 = vsel %vm651_vm6, %v959_v54, -inf }
 0x1ca   : > { %v632_v60 = vpop.f32.mrf.mxu1 }
 0x1cb   : > { %v950_v61 = vpop.f32.mrf.mxu0  ;;  %v706_v4 = vsel %vm651_vm6, %v632_v60, -inf }
 0x1cc   : > { %v680_v5 = vsel %vm651_vm6, %v950_v61, -inf  ;;  %v708_v12 = vmax.f32 %v706_v4, %v707_v10  ;;  %v735_v61 = vadd.f32 %v882_v40, %v696_v52 }
 0x1cd   : > { %v602_v2 = vpop.f32.mrf.mxu0 }
 0x1ce   : > { %v679_v6 = vsel %vm651_vm6, %v602_v2, -inf  ;;  %v709_v20 = vrot.slane %v708_v12, 4  ;;  %v736_v2 = vadd.f32 %v882_v40, %v705_v58 }
 0x1cf   : > { %v681_v8 = vmax.f32 %v679_v6, %v680_v5  ;;  %v756_v5 = vrot.slane %v735_v61, 4 }
 0x1d0   : > { %v710_v28 = vmax.f32 %v708_v12, %v709_v20  ;;  %v759_v9 = vrot.slane %v736_v2, 3 }
 0x1d1   : > { %v682_v13 = vrot.slane %v681_v8, 4 }
 0x1d2   : > { %v711_v35 = vrot.slane %v710_v28, 2 }
 0x1d3   : > { %v683_v17 = vmax.f32 %v681_v8, %v682_v13 }
 0x1d4   : > { %v712_v41 = vmax.f32 %v710_v28, %v711_v35 }
 0x1d5   : > { %v684_v21 = vrot.slane %v683_v17, 2 }
 0x1d6   : > { %v713_v56 = vrot.slane %v712_v41, 1 }
 0x1d7   : > { %v685_v25 = vmax.f32 %v683_v17, %v684_v21 }
 0x1d8   : > { %v714_v1 = vmax.f32 %v712_v41, %v713_v56 }
 0x1d9   : > { %v686_v31 = vrot.slane %v685_v25, 1 }
 0x1da   : > { %v737_v7 = vadd.f32 %v882_v40, %v714_v1 }
 0x1db   : > { %v687_v38 = vmax.f32 %v685_v25, %v686_v31 }
 0x1dc   : > { %v762_v13 = vrot.slane %v737_v7, 2 }
 0x1dd   : > { %v734_v50 = vadd.f32 %v882_v40, %v687_v38 }
 0x1de   : > { %v962_v39 = vpop.f32.mrf.mxu1 }
 0x1df   : > { %v716_v47 = vsel %vm651_vm6, %v962_v39, -inf  ;;  %v753_v59 = vrot.slane %v734_v50, 5 }
 0x1e0   : > { %v642_v44 = vpop.f32.mrf.mxu1 }
 0x1e1   : > { %v715_v46 = vsel %vm651_vm6, %v642_v44, -inf  ;;  %v755_v3 = vsel %vm754_vm8, %v753_v59, %v752_v0 }
 0x1e2   : > { %v717_v51 = vmax.f32 %v715_v46, %v716_v47  ;;  %v758_v8 = vsel %vm757_vm9, %v756_v5, %v755_v3 }
 0x1e3   : > { %v761_v12 = vsel %vm760_vm10, %v759_v9, %v758_v8 }
 0x1e4   : > { %v718_v54 = vrot.slane %v717_v51, 4  ;;  %v764_v15 = vsel %vm763_vm11, %v762_v13, %v761_v12 }
 0x1e6   : > { %v719_v60 = vmax.f32 %v717_v51, %v718_v54 }
 0x1e8   : > { %v720_v63 = vrot.slane %v719_v60, 2 }
 0x1ea   : > { %v721_v4 = vmax.f32 %v719_v60, %v720_v63 }
 0x1ec   : > { %v722_v6 = vrot.slane %v721_v4, 1 }
 0x1ee   : > { %v723_v10 = vmax.f32 %v721_v4, %v722_v6 }
 0x1f0   : > { %v738_v11 = vadd.f32 %v882_v40, %v723_v10 }
 0x1f2   : > { %v765_v14 = vrot.slane %v738_v11, 1 }
 0x1f4   : > { %v767_v16 = vsel %vm766_vm12, %v765_v14, %v764_v15 }
 0x1f5   : > { %769 = vst.msk [vmem:[%s164_s19] sm:$0xff] %vm651_vm6, %v767_v16 }
 0x1f6   : > { %1067 = shalt.err (!%p1064_p3)
}
 0x1f7   : > { %s1068_s5 = scalar_lea.hbm %s1448_s26, 128  ;;  %s1072_s8 = scalar_lea.hbm %s1489_s3, 256 }
 0x1f8   : > { %p1069_p4 = scmp.ne.s32.totalorder %s1448_s26, %s1068_s5  ;;  %p1073_p9 = scmp.lt.s32.totalorder %s1448_s26, %s1489_s3 }
 0x1f9   : > { %p1074_p10 = scmp.lt.s32.totalorder %s1072_s8, %s1068_s5 }
 0x1fa   : > { %p1070_p7 = pnand %p1069_p4, %p1179_p5 }
 0x1fb   : > { %p1075_p11 = por %p1074_p10, %p1073_p9 }
 0x1fc   : > { %p1071_p8 = pneg %p1070_p7 }
 0x1fe   : > { %p1076_p12 = pnand %p1075_p11, %p1071_p8 }
 0x200   : > { %1079 = shalt.err (!%p1076_p12)
}
 0x201   : > { %987 = dma.vmem_to_hbm [thread:$0]  (%p1179_p5), %s785_s20, 128, %s1448_s26, %s771_s27  }
 0x202 PF: > { %p993_p13 = scmp.ge.s32.totalorder %s1114_s15, 2  ;;  %s796_s10 = sand.u32 1, %s1102_s12  }
 0x203   : > { %s797_s11 = scalar_lea.sflag [#allocation3], %s796_s10 }
 0x204   : > { %p990_p0 = pnand %p993_p13, %p1183_p6 }
 0x206   : > { %p991_p1 = pneg %p990_p0 }
 0x208   : > { %1097 = dma.done.wait (%p991_p1), %s797_s11, 128  }
 0x209   : > { %1099 = vsyncadd (%p991_p1), %s797_s11, 4294967168  ;;  %p13_p2 = scmp.ge.s32.totalorder %s1166_s18, 4   ;;  %s1492_s12 = smov %s1106_s13 }
 0x20a   : > { %s1493_s13 = smov %s1110_s14  ;;  %s1494_s14 = smov %s1177_s21 }
 0x20b   : > { %s1495_s15 = smov %s1166_s18  ;;  %15 = sbr.rel (!%p13_p2) target bundleno = 3 (0x3), region = 67 }
 0x210   :  { %802 = vsyncpa [#allocation3], 1 }
 0x211   :  { %804 = vsyncpa [#allocation3 + $0x1], 1 }

</bundles_post_ra>
